<compile_context>
chip_gen: v5e
topology: v5e:2x2
jax: 0.10.0
libtpu: 0.0.40
codegen_flags: <defaults>
</compile_context>

<pallas_src>
import jax
import jax.numpy as jnp
from jax.experimental import pallas as pl
from jax.experimental.pallas import tpu as pltpu

LN_EPS = 1e-5
SLAB_WIDTH = 128  # lane-dense output slab: [score | coeffs... | zero pad]


def _round_up(x, m):
    return ((x + m - 1) // m) * m


# ----------------------- parameter packing (wrapper-side) --------------------

class _SlabPacker:
    """Packs many small f32 matrices into one lane-dense (rows, width) slab.

    Each matrix occupies rows [off, off+r) (off a multiple of 8, sublane
    aligned) and lanes [0, c); pad rows / lanes are zero.  The kernel reads
    each parameter with a static ref slice, so the whole parameter set is a
    single HBM->VMEM DMA.
    """

    def __init__(self, width):
        self.width = width
        self.blocks = []
        self.plan = {}
        self.cur = 0

    def add(self, name, mat):
        mat = jnp.asarray(mat, jnp.float32)
        if mat.ndim == 1:
            mat = mat[None, :]
        r, c = mat.shape
        assert c <= self.width
        rpad = _round_up(r, 8)
        blk = jnp.zeros((rpad, self.width), jnp.float32).at[:r, :c].set(mat)
        self.blocks.append(blk)
        self.plan[name] = (self.cur, r, c)
        self.cur += rpad

    def finalize(self):
        return jnp.concatenate(self.blocks, axis=0), self.plan


def _block_diag(mats):
    rows = sum(m.shape[0] for m in mats)
    cols = sum(m.shape[1] for m in mats)
    out = jnp.zeros((rows, cols), jnp.float32)
    r = c = 0
    for m in mats:
        out = out.at[r:r + m.shape[0], c:c + m.shape[1]].set(m)
        r += m.shape[0]
        c += m.shape[1]
    return out


def _fuse_branch(packer, prefix, bp, V, H, L):
    """Adds one branch's fused parameter matrices to the packer."""
    if V == 1:
        p = bp["block"]
        packer.add(prefix + "W1", p["w1"])
        packer.add(prefix + "b1", p["b1"])
        packer.add(prefix + "gamma", p["gamma"])
        packer.add(prefix + "beta", p["beta"])
        packer.add(prefix + "W2", p["w2"])
        packer.add(prefix + "b2", p["b2"])
        return

    encs = bp["encoders"]
    # All V encoders fused: block-diagonal Linears, lane-concatenated LN params.
    packer.add(prefix + "W1", _block_diag([p["w1"] for p in encs]))
    packer.add(prefix + "b1", jnp.concatenate([p["b1"] for p in encs], -1))
    packer.add(prefix + "gamma", jnp.concatenate([p["gamma"] for p in encs], -1))
    packer.add(prefix + "beta", jnp.concatenate([p["beta"] for p in encs], -1))
    packer.add(prefix + "W2", _block_diag([p["w2"] for p in encs]))
    packer.add(prefix + "b2", jnp.concatenate([p["b2"] for p in encs], -1))

    # Segmented-mean / lane-broadcast selectors for per-view LayerNorm (MXU side).
    segmean = jnp.zeros((V * H, V), jnp.float32)
    expandH = jnp.zeros((V, V * H), jnp.float32)
    for v in range(V):
        segmean = segmean.at[v * H:(v + 1) * H, v].set(1.0 / H)
        expandH = expandH.at[v, v * H:(v + 1) * H].set(1.0)
    packer.add(prefix + "segmeanH", segmean)
    packer.add(prefix + "expandH", expandH)

    # AttentiveAggregator fused forms: block-diagonal projection, selector
    # matmul for 1x1-conv logits, expand / sum matmuls for the weighted sum.
    ap = bp["agg"]
    packer.add(prefix + "Wp", _block_diag([ap["wp"][v] for v in range(V)]))
    packer.add(prefix + "bp", jnp.concatenate([ap["bp"][v] for v in range(V)], -1))
    wsel = jnp.zeros((V * L, V), jnp.float32)
    expandL = jnp.zeros((V, V * L), jnp.float32)
    sumL = jnp.zeros((V * L, L), jnp.float32)
    eye = jnp.eye(L, dtype=jnp.float32)
    for v in range(V):
        wsel = wsel.at[v * L:(v + 1) * L, v].set(ap["wa"][0])
        expandL = expandL.at[v, v * L:(v + 1) * L].set(1.0)
        sumL = sumL.at[v * L:(v + 1) * L, :].set(eye)
    packer.add(prefix + "Wsel", wsel)
    packer.add(prefix + "ba", jnp.full((1, V), ap["ba"][0, 0], jnp.float32))
    packer.add(prefix + "expandL", expandL)
    packer.add(prefix + "sumL", sumL)


def _infer_hl(bp):
    if "block" in bp:
        return bp["block"]["w1"].shape[1], bp["block"]["w2"].shape[1]
    return bp["encoders"][0]["w1"].shape[1], bp["agg"]["wp"].shape[-1]


def pack_fused_params(params, n_views_0, n_views_1):
    """Builds the single packed parameter slab + slice plan (done once)."""
    H, L = _infer_hl(params["branch0"])
    w0 = max(H, L) * (n_views_0 if n_views_0 > 1 else 1)
    w1 = max(H, L) * (n_views_1 if n_views_1 > 1 else 1)
    width = _round_up(max(w0, w1), 128)
    packer = _SlabPacker(width)
    _fuse_branch(packer, "b0/", params["branch0"], n_views_0, H, L)
    _fuse_branch(packer, "b1/", params["branch1"], n_views_1, H, L)
    slab, plan = packer.finalize()
    return dict(slab=slab, plan=plan, V0=n_views_0, V1=n_views_1, H=H, L=L)


# ----------------------------- fused Pallas kernel ---------------------------

def _make_kernel(plan, V0, V1):
    def get(p_ref, name):
        off, r, c = plan[name]
        return p_ref[off:off + r, 0:c]          # static, 8-row / lane-0 aligned slice

    def single_branch(x, p_ref, pre):
        h = jnp.dot(x, get(p_ref, pre + "W1"),
                    preferred_element_type=jnp.float32) + get(p_ref, pre + "b1")
        mu = jnp.mean(h, axis=-1, keepdims=True)
        var = jnp.mean(h * h, axis=-1, keepdims=True) - mu * mu      # one-pass LN
        hn = (h - mu) * jax.lax.rsqrt(var + LN_EPS) * get(p_ref, pre + "gamma") \
             + get(p_ref, pre + "beta")
        a = hn * jax.nn.sigmoid(hn)                                  # SiLU
        # TODO(synk): nn.Dropout is eval-mode identity; training parity would
        # need pltpu.prng_seed / pltpu.prng_random_bits in-kernel.
        out = jnp.dot(a, get(p_ref, pre + "W2"),
                      preferred_element_type=jnp.float32) + get(p_ref, pre + "b2")
        return out, None

    def multi_branch(x, p_ref, pre):
        # All V first Linears as ONE block-diagonal matmul: (B, sum_din) -> (B, V*H)
        h = jnp.dot(x, get(p_ref, pre + "W1"),
                    preferred_element_type=jnp.float32) + get(p_ref, pre + "b1")
        # Per-view one-pass LayerNorm via MXU segmented mean + lane broadcast.
        segmean = get(p_ref, pre + "segmeanH")                        # (V*H, V), 1/H blocks
        expandH = get(p_ref, pre + "expandH")                         # (V, V*H), 0/1
        mu_v = jnp.dot(h, segmean, preferred_element_type=jnp.float32)       # (B, V)
        msq_v = jnp.dot(h * h, segmean, preferred_element_type=jnp.float32)  # (B, V)
        rstd_v = jax.lax.rsqrt(msq_v - mu_v * mu_v + LN_EPS)                 # (B, V)
        mu_b = jnp.dot(mu_v, expandH, preferred_element_type=jnp.float32)    # (B, V*H)
        rstd_b = jnp.dot(rstd_v, expandH, preferred_element_type=jnp.float32)
        hn = (h - mu_b) * rstd_b * get(p_ref, pre + "gamma") + get(p_ref, pre + "beta")
        a = hn * jax.nn.sigmoid(hn)                                   # SiLU; dropout = identity
        enc = jnp.dot(a, get(p_ref, pre + "W2"),
                      preferred_element_type=jnp.float32) + get(p_ref, pre + "b2")  # (B, V*H)

        # AttentiveAggregator: block-diag projection + selector-matmul logits.
        xp = jnp.dot(enc, get(p_ref, pre + "Wp"),
                     preferred_element_type=jnp.float32) + get(p_ref, pre + "bp")   # (B, V*L)
        logits = jnp.dot(xp, get(p_ref, pre + "Wsel"),
                         preferred_element_type=jnp.float32) + get(p_ref, pre + "ba")  # (B, V)
        m = jnp.max(logits, axis=-1, keepdims=True)
        e = jnp.exp(logits - m)
        attn = e / jnp.sum(e, axis=-1, keepdims=True)                 # (B, V)
        # Weighted sum over views: MXU expand-broadcast + identity-block sum.
        attn_b = jnp.dot(attn, get(p_ref, pre + "expandL"),
                         preferred_element_type=jnp.float32)          # (B, V*L)
        out = jnp.dot(attn_b * xp, get(p_ref, pre + "sumL"),
                      preferred_element_type=jnp.float32)             # (B, L)
        return out, attn

    def kernel(x0_ref, x1_ref, p_ref, o_ref):
        x0 = x0_ref[...]
        x1 = x1_ref[...]
        if V0 > 1:
            out0, attn0 = multi_branch(x0, p_ref, "b0/")
        else:
            out0, attn0 = single_branch(x0, p_ref, "b0/")
        if V1 > 1:
            out1, attn1 = multi_branch(x1, p_ref, "b1/")
        else:
            out1, attn1 = single_branch(x1, p_ref, "b1/")
        score = jnp.sum(out0 * out1, axis=-1, keepdims=True)          # (B, 1)
        pieces = [score]
        if attn0 is not None:
            pieces.append(attn0)
        if attn1 is not None:
            pieces.append(attn1)
        cat = jnp.concatenate(pieces, axis=-1)
        pad = SLAB_WIDTH - cat.shape[-1]
        slab = jnp.concatenate(
            [cat, jnp.zeros((cat.shape[0], pad), jnp.float32)], axis=-1)
        o_ref[...] = slab                                             # (B, 128) lane-dense store

    return kernel


# --------------------------------- wrapper -----------------------------------

def plain_multi_branch(x0_list, x1_list, fused):
    """Fused forward: returns (score (B,), [coeffs (B, V) per multi-view branch])."""
    V0, V1 = fused["V0"], fused["V1"]
    assert len(x0_list) == V0 and len(x1_list) == V1
    n_coeff = (V0 if V0 > 1 else 0) + (V1 if V1 > 1 else 0)
    assert 1 + n_coeff <= SLAB_WIDTH, "output slab too narrow for coefficients"
    B = x0_list[0].shape[0]

    x0 = x0_list[0] if V0 == 1 else jnp.concatenate(x0_list, axis=-1)
    x1 = x1_list[0] if V1 == 1 else jnp.concatenate(x1_list, axis=-1)

    kernel = _make_kernel(fused["plan"], V0, V1)
    # Grid-less call (tiny shapes): 3 input DMAs + 1 output DMA total.  When
    # batch grows, switch to grid=(pl.cdiv(B, TB),), batch-blocked x/out specs,
    # constant index_map for the param slab, dimension_semantics=("parallel",).
    out_slab = pl.pallas_call(
        kernel,
        in_specs=[pl.BlockSpec(memory_space=pltpu.MemorySpace.VMEM)] * 3,
        out_specs=pl.BlockSpec(memory_space=pltpu.MemorySpace.VMEM),
        out_shape=jax.ShapeDtypeStruct((B, SLAB_WIDTH), jnp.float32),
    )(x0, x1, fused["slab"])

    score = out_slab[:, 0]
    coeffs = []
    off = 1
    if V0 > 1:
        coeffs.append(out_slab[:, off:off + V0])
        off += V0
    if V1 > 1:
        coeffs.append(out_slab[:, off:off + V1])
        off += V1
    return score, coeffs


# ------------------------- parameter construction ----------------------------

def _linear(key, fan_in, fan_out):
    kw, kb = jax.random.split(key)
    bound = 1.0 / float(fan_in) ** 0.5
    # stored as (in, out); PyTorch stores (out, in) and does x @ W.T
    w = jax.random.uniform(kw, (fan_in, fan_out), jnp.float32, -bound, bound)
    b = jax.random.uniform(kb, (1, fan_out), jnp.float32, -bound, bound)
    return w, b


def _encoder_params(key, din, hidden, dout):
    k1, k2 = jax.random.split(key)
    w1, b1 = _linear(k1, din, hidden)
    w2, b2 = _linear(k2, hidden, dout)
    return dict(w1=w1, b1=b1,
                gamma=jnp.ones((1, hidden), jnp.float32),
                beta=jnp.zeros((1, hidden), jnp.float32),
                w2=w2, b2=b2)


def _branch_params(key, input_dim_list, hidden, latent):
    if len(input_dim_list) == 1:
        return dict(block=_encoder_params(key, input_dim_list[0], hidden, latent))
    V = len(input_dim_list)
    keys = jax.random.split(key, V + 2)
    encoders = [_encoder_params(k, d, hidden, hidden)
                for k, d in zip(keys[:V], input_dim_list)]
    # AttentiveAggregator: per-view Linear(hidden, latent)
    pkeys = jax.random.split(keys[-2], V)
    wps, bps = [], []
    for k in pkeys:
        w, b = _linear(k, hidden, latent)
        wps.append(w)
        bps.append(b)
    # Conv1d(latent, 1, 1): fan_in = latent * kernel_size = latent
    kw, kb = jax.random.split(keys[-1])
    bound = 1.0 / float(latent) ** 0.5
    wa = jax.random.uniform(kw, (1, latent), jnp.float32, -bound, bound)
    ba = jax.random.uniform(kb, (1, 1), jnp.float32, -bound, bound)
    agg = dict(wp=jnp.stack(wps, 0), bp=jnp.stack(bps, 0), wa=wa, ba=ba)
    return dict(encoders=encoders, agg=agg)


# ---------------------------- pure-JAX reference -----------------------------

def _ref_encoder(x, p):
    h = x @ p["w1"] + p["b1"]
    mu = h.mean(-1, keepdims=True)
    var = ((h - mu) ** 2).mean(-1, keepdims=True)
    hn = (h - mu) / jnp.sqrt(var + LN_EPS) * p["gamma"] + p["beta"]
    a = hn * jax.nn.sigmoid(hn)
    return a @ p["w2"] + p["b2"]


def _ref_branch(x_list, bp, coeffs):
    if len(x_list) == 1:
        return _ref_encoder(x_list[0], bp["block"])
    enc = [_ref_encoder(x, p) for x, p in zip(x_list, bp["encoders"])]
    ap = bp["agg"]
    xp = jnp.stack([e @ ap["wp"][v] + ap["bp"][v] for v, e in enumerate(enc)],
                   axis=1)                                    # (B, V, L)
    logits = jnp.sum(xp * ap["wa"], axis=-1) + ap["ba"]       # (B, V)
    attn = jax.nn.softmax(logits, axis=-1)
    coeffs.append(attn)
    return jnp.sum(xp * attn[:, :, None], axis=1)


def _ref_model(x0_list, x1_list, params):
    coeffs = []
    o0 = _ref_branch(x0_list, params["branch0"], coeffs)
    o1 = _ref_branch(x1_list, params["branch1"], coeffs)
    return jnp.sum(o0 * o1, axis=1), coeffs


# --------------------------------- main ---------------------------------------

if __name__ == "__main__":
    B = 8
    input_dim_list_0 = [16, 24]   # multi-view branch -> AttentiveAggregator
    input_dim_list_1 = [20]       # single-view branch
    hidden_dim = 32
    latent_dim = 32

    root = jax.random.PRNGKey(0)
    kp0, kp1, kx0a, kx0b, kx1 = jax.random.split(root, 5)

    params = dict(
        branch0=_branch_params(kp0, input_dim_list_0, hidden_dim, latent_dim),
        branch1=_branch_params(kp1, input_dim_list_1, hidden_dim, latent_dim),
    )
    fused = pack_fused_params(params, len(input_dim_list_0), len(input_dim_list_1))

    x0 = [jax.random.normal(kx0a, (B, input_dim_list_0[0]), jnp.float32),
          jax.random.normal(kx0b, (B, input_dim_list_0[1]), jnp.float32)]
    x1 = [jax.random.normal(kx1, (B, input_dim_list_1[0]), jnp.float32)]

    score, coeffs = plain_multi_branch(x0, x1, fused)
    score = jax.block_until_ready(score)
    coeffs = [jax.block_until_ready(c) for c in coeffs]

    ref_score, ref_coeffs = _ref_model(x0, x1, params)
    assert score.shape == (B,)
    assert len(coeffs) == 1 and coeffs[0].shape == (B, len(input_dim_list_0))
    assert jnp.allclose(score, ref_score, atol=1e-4, rtol=1e-4)
    assert jnp.allclose(coeffs[0], ref_coeffs[0], atol=1e-4, rtol=1e-4)

    print("KERNEL_OK")
</pallas_src>

<mosaic_0001>
module attributes {stable_mosaic.version = 11 : i64} {
  func.func @kernel(%arg0: memref<8x40xf32, #tpu.memory_space<vmem>>, %arg1: memref<8x20xf32, #tpu.memory_space<vmem>>, %arg2: memref<512x128xf32, #tpu.memory_space<vmem>>, %arg3: memref<8x128xf32, #tpu.memory_space<vmem>>) attributes {dimension_semantics = [], scalar_prefetch = 0 : i64, scratch_operands = 0 : i64, tpu.core_type = #tpu.core_type<tc>} {
    %c0 = arith.constant 0 : index
    %c0_0 = arith.constant 0 : index
    %0 = vector.load %arg0[%c0, %c0_0] : memref<8x40xf32, #tpu.memory_space<vmem>>, vector<8x40xf32>
    %c0_1 = arith.constant 0 : index
    %c0_2 = arith.constant 0 : index
    %1 = vector.load %arg1[%c0_1, %c0_2] : memref<8x20xf32, #tpu.memory_space<vmem>>, vector<8x20xf32>
    %c0_3 = arith.constant 0 : index
    %c0_4 = arith.constant 0 : index
    %2 = vector.load %arg2[%c0_3, %c0_4] : memref<512x128xf32, #tpu.memory_space<vmem>>, vector<40x64xf32>
    %cst = arith.constant dense<0.000000e+00> : vector<8x64xf32>
    %3 = tpu.matmul %0, %2, %cst {dimension_numbers = #tpu.dot_dimension_numbers<[1], [0], [0], [1], [0, 0, 1, 1], [], []>} : vector<8x40xf32>, vector<40x64xf32>, vector<8x64xf32> -> vector<8x64xf32>
    %c40 = arith.constant 40 : index
    %c0_5 = arith.constant 0 : index
    %4 = vector.load %arg2[%c40, %c0_5] : memref<512x128xf32, #tpu.memory_space<vmem>>, vector<1x64xf32>
    %5 = vector.broadcast %4 : vector<1x64xf32> to vector<8x64xf32>
    %6 = arith.addf %3, %5 : vector<8x64xf32>
    %c136 = arith.constant 136 : index
    %c0_6 = arith.constant 0 : index
    %7 = vector.load %arg2[%c136, %c0_6] : memref<512x128xf32, #tpu.memory_space<vmem>>, vector<64x2xf32>
    %c200 = arith.constant 200 : index
    %c0_7 = arith.constant 0 : index
    %8 = vector.load %arg2[%c200, %c0_7] : memref<512x128xf32, #tpu.memory_space<vmem>>, vector<2x64xf32>
    %cst_8 = arith.constant dense<0.000000e+00> : vector<8x2xf32>
    %9 = tpu.matmul %6, %7, %cst_8 {dimension_numbers = #tpu.dot_dimension_numbers<[1], [0], [0], [1], [0, 0, 1, 1], [], []>} : vector<8x64xf32>, vector<64x2xf32>, vector<8x2xf32> -> vector<8x2xf32>
    %10 = arith.mulf %6, %6 : vector<8x64xf32>
    %cst_9 = arith.constant dense<0.000000e+00> : vector<8x2xf32>
    %11 = tpu.matmul %10, %7, %cst_9 {dimension_numbers = #tpu.dot_dimension_numbers<[1], [0], [0], [1], [0, 0, 1, 1], [], []>} : vector<8x64xf32>, vector<64x2xf32>, vector<8x2xf32> -> vector<8x2xf32>
    %12 = arith.mulf %9, %9 : vector<8x2xf32>
    %13 = arith.subf %11, %12 : vector<8x2xf32>
    %cst_10 = arith.constant 9.99999974E-6 : f32
    %14 = vector.broadcast %cst_10 : f32 to vector<8x2xf32>
    %15 = arith.addf %13, %14 : vector<8x2xf32>
    %16 = math.rsqrt %15 : vector<8x2xf32>
    %cst_11 = arith.constant dense<0.000000e+00> : vector<8x64xf32>
    %17 = tpu.matmul %9, %8, %cst_11 {dimension_numbers = #tpu.dot_dimension_numbers<[1], [0], [0], [1], [0, 0, 1, 1], [], []>} : vector<8x2xf32>, vector<2x64xf32>, vector<8x64xf32> -> vector<8x64xf32>
    %cst_12 = arith.constant dense<0.000000e+00> : vector<8x64xf32>
    %18 = tpu.matmul %16, %8, %cst_12 {dimension_numbers = #tpu.dot_dimension_numbers<[1], [0], [0], [1], [0, 0, 1, 1], [], []>} : vector<8x2xf32>, vector<2x64xf32>, vector<8x64xf32> -> vector<8x64xf32>
    %19 = arith.subf %6, %17 : vector<8x64xf32>
    %20 = arith.mulf %19, %18 : vector<8x64xf32>
    %c48 = arith.constant 48 : index
    %c0_13 = arith.constant 0 : index
    %21 = vector.load %arg2[%c48, %c0_13] : memref<512x128xf32, #tpu.memory_space<vmem>>, vector<1x64xf32>
    %22 = vector.broadcast %21 : vector<1x64xf32> to vector<8x64xf32>
    %23 = arith.mulf %20, %22 : vector<8x64xf32>
    %c56 = arith.constant 56 : index
    %c0_14 = arith.constant 0 : index
    %24 = vector.load %arg2[%c56, %c0_14] : memref<512x128xf32, #tpu.memory_space<vmem>>, vector<1x64xf32>
    %25 = vector.broadcast %24 : vector<1x64xf32> to vector<8x64xf32>
    %26 = arith.addf %23, %25 : vector<8x64xf32>
    %27 = arith.negf %26 : vector<8x64xf32>
    %28 = math.exp %27 : vector<8x64xf32>
    %cst_15 = arith.constant 1.000000e+00 : f32
    %29 = vector.broadcast %cst_15 : f32 to vector<8x64xf32>
    %30 = arith.addf %29, %28 : vector<8x64xf32>
    %31 = arith.divf %29, %30 : vector<8x64xf32>
    %32 = arith.mulf %26, %31 : vector<8x64xf32>
    %c64 = arith.constant 64 : index
    %c0_16 = arith.constant 0 : index
    %33 = vector.load %arg2[%c64, %c0_16] : memref<512x128xf32, #tpu.memory_space<vmem>>, vector<64x64xf32>
    %cst_17 = arith.constant dense<0.000000e+00> : vector<8x64xf32>
    %34 = tpu.matmul %32, %33, %cst_17 {dimension_numbers = #tpu.dot_dimension_numbers<[1], [0], [0], [1], [0, 0, 1, 1], [], []>} : vector<8x64xf32>, vector<64x64xf32>, vector<8x64xf32> -> vector<8x64xf32>
    %c128 = arith.constant 128 : index
    %c0_18 = arith.constant 0 : index
    %35 = vector.load %arg2[%c128, %c0_18] : memref<512x128xf32, #tpu.memory_space<vmem>>, vector<1x64xf32>
    %36 = vector.broadcast %35 : vector<1x64xf32> to vector<8x64xf32>
    %37 = arith.addf %34, %36 : vector<8x64xf32>
    %c208 = arith.constant 208 : index
    %c0_19 = arith.constant 0 : index
    %38 = vector.load %arg2[%c208, %c0_19] : memref<512x128xf32, #tpu.memory_space<vmem>>, vector<64x64xf32>
    %cst_20 = arith.constant dense<0.000000e+00> : vector<8x64xf32>
    %39 = tpu.matmul %37, %38, %cst_20 {dimension_numbers = #tpu.dot_dimension_numbers<[1], [0], [0], [1], [0, 0, 1, 1], [], []>} : vector<8x64xf32>, vector<64x64xf32>, vector<8x64xf32> -> vector<8x64xf32>
    %c272 = arith.constant 272 : index
    %c0_21 = arith.constant 0 : index
    %40 = vector.load %arg2[%c272, %c0_21] : memref<512x128xf32, #tpu.memory_space<vmem>>, vector<1x64xf32>
    %41 = vector.broadcast %40 : vector<1x64xf32> to vector<8x64xf32>
    %42 = arith.addf %39, %41 : vector<8x64xf32>
    %c280 = arith.constant 280 : index
    %c0_22 = arith.constant 0 : index
    %43 = vector.load %arg2[%c280, %c0_22] : memref<512x128xf32, #tpu.memory_space<vmem>>, vector<64x2xf32>
    %cst_23 = arith.constant dense<0.000000e+00> : vector<8x2xf32>
    %44 = tpu.matmul %42, %43, %cst_23 {dimension_numbers = #tpu.dot_dimension_numbers<[1], [0], [0], [1], [0, 0, 1, 1], [], []>} : vector<8x64xf32>, vector<64x2xf32>, vector<8x2xf32> -> vector<8x2xf32>
    %c344 = arith.constant 344 : index
    %c0_24 = arith.constant 0 : index
    %45 = vector.load %arg2[%c344, %c0_24] : memref<512x128xf32, #tpu.memory_space<vmem>>, vector<1x2xf32>
    %46 = vector.broadcast %45 : vector<1x2xf32> to vector<8x2xf32>
    %47 = arith.addf %44, %46 : vector<8x2xf32>
    %cst_25 = arith.constant dense<0xFF800000> : vector<8xf32>
    %48 = vector.multi_reduction <maximumf>, %47, %cst_25 [1] : vector<8x2xf32> to vector<8xf32>
    %49 = vector.shape_cast %48 : vector<8xf32> to vector<8x1xf32>
    %50 = vector.broadcast %49 : vector<8x1xf32> to vector<8x2xf32>
    %51 = arith.subf %47, %50 : vector<8x2xf32>
    %52 = math.exp %51 : vector<8x2xf32>
    %cst_26 = arith.constant dense<0.000000e+00> : vector<8xf32>
    %53 = vector.multi_reduction <add>, %52, %cst_26 [1] : vector<8x2xf32> to vector<8xf32>
    %54 = vector.shape_cast %53 : vector<8xf32> to vector<8x1xf32>
    %55 = vector.broadcast %54 : vector<8x1xf32> to vector<8x2xf32>
    %56 = arith.divf %52, %55 : vector<8x2xf32>
    %c352 = arith.constant 352 : index
    %c0_27 = arith.constant 0 : index
    %57 = vector.load %arg2[%c352, %c0_27] : memref<512x128xf32, #tpu.memory_space<vmem>>, vector<2x64xf32>
    %cst_28 = arith.constant dense<0.000000e+00> : vector<8x64xf32>
    %58 = tpu.matmul %56, %57, %cst_28 {dimension_numbers = #tpu.dot_dimension_numbers<[1], [0], [0], [1], [0, 0, 1, 1], [], []>} : vector<8x2xf32>, vector<2x64xf32>, vector<8x64xf32> -> vector<8x64xf32>
    %59 = arith.mulf %58, %42 : vector<8x64xf32>
    %c360 = arith.constant 360 : index
    %c0_29 = arith.constant 0 : index
    %60 = vector.load %arg2[%c360, %c0_29] : memref<512x128xf32, #tpu.memory_space<vmem>>, vector<64x32xf32>
    %cst_30 = arith.constant dense<0.000000e+00> : vector<8x32xf32>
    %61 = tpu.matmul %59, %60, %cst_30 {dimension_numbers = #tpu.dot_dimension_numbers<[1], [0], [0], [1], [0, 0, 1, 1], [], []>} : vector<8x64xf32>, vector<64x32xf32>, vector<8x32xf32> -> vector<8x32xf32>
    %c424 = arith.constant 424 : index
    %c0_31 = arith.constant 0 : index
    %62 = vector.load %arg2[%c424, %c0_31] : memref<512x128xf32, #tpu.memory_space<vmem>>, vector<20x32xf32>
    %cst_32 = arith.constant dense<0.000000e+00> : vector<8x32xf32>
    %63 = tpu.matmul %1, %62, %cst_32 {dimension_numbers = #tpu.dot_dimension_numbers<[1], [0], [0], [1], [0, 0, 1, 1], [], []>} : vector<8x20xf32>, vector<20x32xf32>, vector<8x32xf32> -> vector<8x32xf32>
    %c448 = arith.constant 448 : index
    %c0_33 = arith.constant 0 : index
    %64 = vector.load %arg2[%c448, %c0_33] : memref<512x128xf32, #tpu.memory_space<vmem>>, vector<1x32xf32>
    %65 = vector.broadcast %64 : vector<1x32xf32> to vector<8x32xf32>
    %66 = arith.addf %63, %65 : vector<8x32xf32>
    %cst_34 = arith.constant dense<0.000000e+00> : vector<8xf32>
    %67 = vector.multi_reduction <add>, %66, %cst_34 [1] : vector<8x32xf32> to vector<8xf32>
    %68 = vector.shape_cast %67 : vector<8xf32> to vector<8x1xf32>
    %cst_35 = arith.constant 3.200000e+01 : f32
    %69 = vector.broadcast %cst_35 : f32 to vector<8x1xf32>
    %70 = arith.divf %68, %69 : vector<8x1xf32>
    %71 = arith.mulf %66, %66 : vector<8x32xf32>
    %cst_36 = arith.constant dense<0.000000e+00> : vector<8xf32>
    %72 = vector.multi_reduction <add>, %71, %cst_36 [1] : vector<8x32xf32> to vector<8xf32>
    %73 = vector.shape_cast %72 : vector<8xf32> to vector<8x1xf32>
    %cst_37 = arith.constant 3.200000e+01 : f32
    %74 = vector.broadcast %cst_37 : f32 to vector<8x1xf32>
    %75 = arith.divf %73, %74 : vector<8x1xf32>
    %76 = arith.mulf %70, %70 : vector<8x1xf32>
    %77 = arith.subf %75, %76 : vector<8x1xf32>
    %78 = vector.broadcast %70 : vector<8x1xf32> to vector<8x32xf32>
    %79 = arith.subf %66, %78 : vector<8x32xf32>
    %cst_38 = arith.constant 9.99999974E-6 : f32
    %80 = vector.broadcast %cst_38 : f32 to vector<8x1xf32>
    %81 = arith.addf %77, %80 : vector<8x1xf32>
    %82 = math.rsqrt %81 : vector<8x1xf32>
    %83 = vector.broadcast %82 : vector<8x1xf32> to vector<8x32xf32>
    %84 = arith.mulf %79, %83 : vector<8x32xf32>
    %c456 = arith.constant 456 : index
    %c0_39 = arith.constant 0 : index
    %85 = vector.load %arg2[%c456, %c0_39] : memref<512x128xf32, #tpu.memory_space<vmem>>, vector<1x32xf32>
    %86 = vector.broadcast %85 : vector<1x32xf32> to vector<8x32xf32>
    %87 = arith.mulf %84, %86 : vector<8x32xf32>
    %c464 = arith.constant 464 : index
    %c0_40 = arith.constant 0 : index
    %88 = vector.load %arg2[%c464, %c0_40] : memref<512x128xf32, #tpu.memory_space<vmem>>, vector<1x32xf32>
    %89 = vector.broadcast %88 : vector<1x32xf32> to vector<8x32xf32>
    %90 = arith.addf %87, %89 : vector<8x32xf32>
    %91 = arith.negf %90 : vector<8x32xf32>
    %92 = math.exp %91 : vector<8x32xf32>
    %cst_41 = arith.constant 1.000000e+00 : f32
    %93 = vector.broadcast %cst_41 : f32 to vector<8x32xf32>
    %94 = arith.addf %93, %92 : vector<8x32xf32>
    %95 = arith.divf %93, %94 : vector<8x32xf32>
    %96 = arith.mulf %90, %95 : vector<8x32xf32>
    %c472 = arith.constant 472 : index
    %c0_42 = arith.constant 0 : index
    %97 = vector.load %arg2[%c472, %c0_42] : memref<512x128xf32, #tpu.memory_space<vmem>>, vector<32x32xf32>
    %cst_43 = arith.constant dense<0.000000e+00> : vector<8x32xf32>
    %98 = tpu.matmul %96, %97, %cst_43 {dimension_numbers = #tpu.dot_dimension_numbers<[1], [0], [0], [1], [0, 0, 1, 1], [], []>} : vector<8x32xf32>, vector<32x32xf32>, vector<8x32xf32> -> vector<8x32xf32>
    %c504 = arith.constant 504 : index
    %c0_44 = arith.constant 0 : index
    %99 = vector.load %arg2[%c504, %c0_44] : memref<512x128xf32, #tpu.memory_space<vmem>>, vector<1x32xf32>
    %100 = vector.broadcast %99 : vector<1x32xf32> to vector<8x32xf32>
    %101 = arith.addf %98, %100 : vector<8x32xf32>
    %102 = arith.mulf %61, %101 : vector<8x32xf32>
    %cst_45 = arith.constant dense<0.000000e+00> : vector<8xf32>
    %103 = vector.multi_reduction <add>, %102, %cst_45 [1] : vector<8x32xf32> to vector<8xf32>
    %104 = vector.shape_cast %103 : vector<8xf32> to vector<8x1xf32>
    %105 = tpu.concatenate %104, %56 in 1 : vector<8x1xf32>, vector<8x2xf32> -> vector<8x3xf32>
    %cst_46 = arith.constant 0.000000e+00 : f32
    %106 = vector.broadcast %cst_46 : f32 to vector<8x125xf32>
    %107 = tpu.concatenate %105, %106 in 1 : vector<8x3xf32>, vector<8x125xf32> -> vector<8x128xf32>
    %c0_47 = arith.constant 0 : index
    %c0_48 = arith.constant 0 : index
    %108 = vector.load %arg3[%c0_47, %c0_48] : memref<8x128xf32, #tpu.memory_space<vmem>>, vector<8x128xf32>
    tpu.vector_store %arg3[%c0_47, %c0_48], %107 {strides = array<i32>} : memref<8x128xf32, #tpu.memory_space<vmem>>, vector<8x128xf32>,
    return
  }
}

</mosaic_0001>

<bundles_post_ra>
// kernel: tpu_custom_call.1
= control target key start
LH: loop header
LB: loop body
LE: loop exit
PB: predicated region body
PF: predicated region fallthrough
CT: control target
= control target key end

     0   :  { %8 = vsyncpa [#allocation3], 0  ;;  %s790_s0 = inlined_call_operand.hbm [shape: f32[8,40], index: 0, kind: input, shape index: {}]   ;;  %s791_s1 = inlined_call_operand.hbm [shape: f32[8,20], index: 1, kind: input, shape index: {}]   ;;  %s792_s2 = inlined_call_operand.hbm [shape: f32[512,128], index: 2, kind: input, shape index: {}]   ;;  %s793_s3 = inlined_call_operand.hbm [shape: f32[8,128], index: 3, kind: output, shape index: {}]  }
   0x1   :  { %9 = vsyncpa [#allocation6], 0  ;;  %s27_s14 = sshll.u32 %s791_s1, 4  ;;  %s28_s14 = int_to_ptr.hbm [resolvable:$true] %s27_s14 }
   0x2   :  { %10 = vsyncpa [#allocation4], 0  ;;  %s728_s15 = smov [#allocation5]   ;;  %s16_s19 = sshll.u32 %s790_s0, 4  ;;  %s17_s19 = int_to_ptr.hbm [resolvable:$true] %s16_s19 }
   0x3   :  { %s29_s16 = sshll.u32 %s728_s15, 4  ;;  %s729_s20 = smov [#allocation2]   ;;  %s30_s16 = int_to_ptr.vmem [resolvable:$true] %s29_s16 }
   0x4   :  { %32 = dma.hbm_to_vmem [thread:$0]  %s28_s14, 128, %s30_s16, [#allocation6]  }
   0x5   :  { %s18_s21 = sshll.u32 %s729_s20, 4  ;;  %s37_s24 = sshll.u32 %s792_s2, 4  ;;  %s19_s21 = int_to_ptr.vmem [resolvable:$true] %s18_s21  ;;  %s38_s24 = int_to_ptr.hbm [resolvable:$true] %s37_s24 }
   0x6   :  { %21 = dma.hbm_to_vmem [thread:$0]  %s17_s19, 128, %s19_s21, [#allocation3]  }
   0x7   :  { %s730_s1 = smov [#allocation7]   ;;  %s731_s26 = smov 128  }
   0x8   :  { %s39_s25 = sshll.u32 %s730_s1, 4  ;;  %s732_s27 = smov 8   ;;  %s40_s25 = int_to_ptr.vmem [resolvable:$true] %s39_s25 }
   0x9   :  { %45 = dma.hbm_to_vmem [thread:$0]  %s38_s24, 8192, %s40_s25, [#allocation6], %s731_s26, %s731_s26, %s732_s27  }
   0xa   :  { %722 = dma.done.wait [#allocation3], 128  }
   0xb   :  { %723 = vsyncadd [#allocation3], 4294967168 }
   0xc   :  { %724 = dma.done.wait [#allocation6], 8320  }
   0xd   :  { %725 = vsyncadd [#allocation6], 4294958976  ;;  %v64_v0 = vld [vmem:[#allocation7 + $0x20] sm:$0xff]  ;;  %v63_v1 = vld [vmem:[#allocation7 + $0x18] sm:$0xff]  ;;  %vm67_vm0 = vcmask 326656   ;;  %vm100_vm1 = vcmask 523264  }
   0xe   :  { %82 = vmatpush.msra.mxu0 %v64_v0  ;;  %v62_v2 = vld [vmem:[#allocation7 + $0x10] sm:$0xff]  ;;  %v98_v3 = vld [vmem:[#allocation7 + $0xc0] sm:$0xff]  ;;  %v97_v4 = vld [vmem:[#allocation7 + $0xb8] sm:$0xff]  ;;  %vm165_vm2 = vcmask 1041408   ;;  %vm161_vm3 = vcmask 15360   ;;  %vm431_vm11 = vcmask 1043456  }
   0xf   :  { %v61_v5 = vld [vmem:[#allocation7 + $0x8] sm:$0xff]  ;;  %112 = vmatpush.msra.mxu1 %v98_v3  ;;  %v96_v6 = vld [vmem:[#allocation7 + $0xb0] sm:$0xff]  ;;  %v60_v7 = vld [vmem:[#allocation7] sm:$0xff]  ;;  %136 = vmatpush.msra.mxu2 %v98_v3  ;;  %vm427_vm12 = vcmask 162816   ;;  %vm455_vm13 = vcmask 261120   ;;  %s734_s0 = smov 1  }
  0x10   :  { %83 = vmatpush.msra.mxu0 %v63_v1  ;;  %v95_v8 = vld [vmem:[#allocation7 + $0xa8] sm:$0xff]  ;;  %v58_v9 = vld [vmem:[#allocation2] sm:$0xff]  ;;  %v94_v10 = vld [vmem:[#allocation7 + $0xa0] sm:$0xff]  ;;  %s735_s2 = smov [#allocation8]   ;;  %s561_s4 = sshll.u32 %s793_s3, 4  ;;  %s562_s4 = int_to_ptr.hbm [resolvable:$true] %s561_s4 }
  0x11   :  { %113 = vmatpush.msra.mxu1 %v97_v4  ;;  %137 = vmatpush.msra.mxu2 %v97_v4  ;;  %v93_v11 = vld [vmem:[#allocation7 + $0x98] sm:$0xff]  ;;  %v92_v12 = vld [vmem:[#allocation7 + $0x90] sm:$0xff]  ;;  %v91_v13 = vld [vmem:[#allocation7 + $0x88] sm:$0xff]  ;;  %s559_s28 = sshll.u32 %s735_s2, 4  ;;  %s560_s28 = int_to_ptr.vmem [resolvable:$true] %s559_s28 }
  0x12   :  { %84 = vmatpush.msra.mxu0 %v62_v2  ;;  %v598_v14 = vld [vmem:[#allocation7 + $0x28] ss:$0 sm:$0xff]  ;;  %v247_v31 = vld [vmem:[#allocation7 + $0x78] sm:$0xff]  ;;  %v246_v32 = vld [vmem:[#allocation7 + $0x70] sm:$0xff] }
  0x13   :  { %114 = vmatpush.msra.mxu1 %v96_v6  ;;  %138 = vmatpush.msra.mxu2 %v96_v6  ;;  %v99_v18 = vld [vmem:[#allocation7 + $0xc8] sm:$0x3]  ;;  %v244_v35 = vld [vmem:[#allocation7 + $0x60] sm:$0xff]  ;;  %v243_v36 = vld [vmem:[#allocation7 + $0x58] sm:$0xff] }
  0x14   :  { %85 = vmatpush.msra.mxu0 %v61_v5  ;;  %575 = vmatpush.msk.msra.mxu3 %vm165_vm2, %v99_v18  ;;  %v245_v34 = vld [vmem:[#allocation7 + $0x68] sm:$0xff]  ;;  %v599_v38 = vld [vmem:[#allocation7 + $0x30] ss:$0 sm:$0xff]  ;;  %v600_v42 = vld [vmem:[#allocation7 + $0x38] ss:$0 sm:$0xff] }
  0x15   :  { %115 = vmatpush.msra.mxu1 %v95_v8  ;;  %139 = vmatpush.msra.mxu2 %v95_v8  ;;  %v242_v39 = vld [vmem:[#allocation7 + $0x50] sm:$0xff]  ;;  %v241_v43 = vld [vmem:[#allocation7 + $0x48] sm:$0xff]  ;;  %v240_v45 = vld [vmem:[#allocation7 + $0x40] sm:$0xff] }
  0x16   :  { %86 = vmatpush.msra.mxu0 %v60_v7  ;;  %577 = vmatpush.msk.msrb.mxu3 %vm165_vm2, %v99_v18  ;;  %v280_v47 = vld [vmem:[#allocation7 + $0x108] sm:$0xff]  ;;  %v279_v48 = vld [vmem:[#allocation7 + $0x100] sm:$0xff]  ;;  %v278_v50 = vld [vmem:[#allocation7 + $0xf8] sm:$0xff] }
  0x17   :  { %572 = vmatmul.msk.f32.vlgmr.msra.gmra.mxu0 %vm67_vm0, %v58_v9  ;;  %116 = vmatpush.msra.mxu1 %v94_v10  ;;  %v277_v51 = vld [vmem:[#allocation7 + $0xf0] sm:$0xff]  ;;  %v276_v52 = vld [vmem:[#allocation7 + $0xe8] sm:$0xff]  ;;  %v275_v53 = vld [vmem:[#allocation7 + $0xe0] sm:$0xff] }
  0x18   :  { %140 = vmatpush.msra.mxu2 %v94_v10  ;;  %261 = vmatpush.msrb.mxu0 %v247_v31  ;;  %v274_v3 = vld [vmem:[#allocation7 + $0xd8] sm:$0xff]  ;;  %v273_v4 = vld [vmem:[#allocation7 + $0xd0] sm:$0xff]  ;;  %v312_v6 = vld [vmem:[#allocation7 + $0x148] sm:$0xff] }
  0x19   :  { %117 = vmatpush.msra.mxu1 %v93_v11  ;;  %v313_v5 = vld [vmem:[#allocation7 + $0x150] sm:$0xff]  ;;  %v311_v7 = vld [vmem:[#allocation7 + $0x140] sm:$0xff]  ;;  %v310_v8 = vld [vmem:[#allocation7 + $0x138] sm:$0xff] }
  0x1a   :  { %141 = vmatpush.msra.mxu2 %v93_v11  ;;  %262 = vmatpush.msrb.mxu0 %v246_v32  ;;  %v309_v9 = vld [vmem:[#allocation7 + $0x130] sm:$0xff]  ;;  %v308_v10 = vld [vmem:[#allocation7 + $0x128] sm:$0xff]  ;;  %v601_v11 = vld [vmem:[#allocation7 + $0x80] ss:$0 sm:$0xff] }
  0x1b   :  { %118 = vmatpush.msra.mxu1 %v92_v12  ;;  %v422_v18 = vld [vmem:[#allocation7 + $0x1a8] sm:$0xff] }
  0x1c   :  { %142 = vmatpush.msra.mxu2 %v92_v12  ;;  %263 = vmatpush.msrb.mxu0 %v245_v34 }
  0x1d   :  { %119 = vmatpush.msra.mxu1 %v91_v13 }
  0x1e   :  { %143 = vmatpush.msra.mxu2 %v91_v13  ;;  %264 = vmatpush.msrb.mxu0 %v244_v35 }
  0x1f   :  { %327 = vmatpush.msrb.mxu1 %v313_v5 }
  0x20   :  { %265 = vmatpush.msrb.mxu0 %v243_v36 }
  0x21   :  { %328 = vmatpush.msrb.mxu1 %v312_v6 }
  0x22   :  { %266 = vmatpush.msrb.mxu0 %v242_v39  ;;  %v516_v39 = vld [vmem:[#allocation7 + $0x1f0] sm:$0xff] }
  0x23   :  { %329 = vmatpush.msrb.mxu1 %v311_v7 }
  0x24   :  { %267 = vmatpush.msrb.mxu0 %v241_v43  ;;  %v514_v43 = vld [vmem:[#allocation7 + $0x1e0] sm:$0xff] }
  0x25   :  { %330 = vmatpush.msrb.mxu1 %v310_v8 }
  0x26   :  { %268 = vmatpush.msrb.mxu0 %v240_v45 }
  0x27   :  { %331 = vmatpush.msrb.mxu1 %v309_v9 }
  0x29   :  { %332 = vmatpush.msrb.mxu1 %v308_v10 }
  0x94   :  { %v88_v15 = vpop.f32.mrf.mxu0 }
  0x95   :  { %v89_v16 = vadd.f32 %v598_v14, %v88_v15  ;;  %v307_v14 = vld [vmem:[#allocation7 + $0x120] sm:$0xff]  ;;  %v306_v15 = vld [vmem:[#allocation7 + $0x118] sm:$0xff] }
  0x96   :  { %333 = vmatpush.msrb.mxu1 %v307_v14 }
  0x97   :  { %573 = vmatmul.msk.f32.vlgmr.msra.gmra.mxu1 %vm100_vm1, %v89_v16  ;;  %v124_v17 = vmul.f32 %v89_v16, %v89_v16 }
  0x98   :  { %334 = vmatpush.msrb.mxu1 %v306_v15 }
  0x99   :  { %574 = vmatmul.msk.f32.vlgmr.msra.gmra.mxu2 %vm100_vm1, %v124_v17  ;;  %v423_v17 = vld [vmem:[#allocation7 + $0x1b0] sm:$0xff] }
 0x114   :  { %v121_v19 = vpop.f32.mrf.mxu1 }
 0x115   :  { %576 = vmatmul.msk.f32.vlgmr.msra.gmra.mxu3 %vm161_vm3, %v121_v19  ;;  %v148_v20 = vmul.f32 %v121_v19, %v121_v19  ;;  %v59_v19 = vld [vmem:[#allocation5] sm:$0xff] }
 0x116   :  { %294 = vmatpush.msra.mxu3 %v280_v47  ;;  %v513_v47 = vld [vmem:[#allocation7 + $0x1d8] sm:$0xff] }
 0x118   :  { %295 = vmatpush.msra.mxu3 %v279_v48 }
 0x11a   :  { %296 = vmatpush.msra.mxu3 %v278_v50 }
 0x11c   :  { %v145_v21 = vpop.f32.mrf.mxu2  ;;  %297 = vmatpush.msra.mxu3 %v277_v51 }
 0x11d   :  { %v149_v22 = vsub.f32 %v145_v21, %v148_v20  ;;  %v602_v20 = vld [vmem:[#allocation7 + $0x110] ss:$0 sm:$0xff] }
 0x11e   :  { %298 = vmatpush.msra.mxu3 %v276_v52 }
 0x11f   :  { %v150_v23 = vadd.f32 1e-05, %v149_v22 }
 0x120   :  { %299 = vmatpush.msra.mxu3 %v275_v53 }
 0x121   :  { %608 = vrsqrt.f32 %v150_v23  ;;  %vm157_vm5 = vweird.f32 %v150_v23 }
 0x122   :  { %300 = vmatpush.msra.mxu3 %v274_v3 }
 0x124   :  { %301 = vmatpush.msra.mxu3 %v273_v4 }
 0x127   :  { %v609_v24 = vpop.eup %608 }
 0x128   :  { %v152_v25 = vmul.f32 %v609_v24, %v150_v23  ;;  %vm158_vm4 = vweird.f32 %v609_v24  ;;  %v604_v23 = vld [vmem:[#allocation7 + $0x1c0] ss:$0 sm:$0xff] }
 0x129   :  { %vm159_vm6 = vmor %vm157_vm5, %vm158_vm4 }
 0x12a   :  { %v153_v26 = vmul.f32 %v609_v24, %v152_v25 }
 0x12c   :  { %v154_v27 = vmul.f32 0.5, %v153_v26 }
 0x12e   :  { %v155_v28 = vsub.f32 1.5, %v154_v27 }
 0x130   :  { %v156_v29 = vmul.f32 %v609_v24, %v155_v28 }
 0x132   :  { %v160_v30 = vsel %vm159_vm6, %v609_v24, %v156_v29  ;;  %v603_v29 = vld [vmem:[#allocation7 + $0x158] ss:$0 sm:$0xff] }
 0x133   :  { %578 = vmatmul.msk.f32.vlgmr.msrb.gmra.mxu3 %vm161_vm3, %v160_v30 }
 0x134   :  { %534 = vmatpush.msrb.mxu3 %v516_v39  ;;  %v392_v39 = vld [vmem:[#allocation7 + $0x170] sm:$0xff] }
 0x198   :  { %v186_v33 = vpop.f32.mrf.mxu3 }
 0x199   :  { %v212_v37 = vsub.f32 %v89_v16, %v186_v33  ;;  %v424_v16 = vld [vmem:[#allocation7 + $0x1b8] sm:$0xf]  ;;  %v733_v33 = vmov 32.0  }
 0x19a   :  { %586 = vmatpush.msk.msra.mxu0 %vm431_vm11, %v424_v16 }
 0x19c   :  { %449 = vmatpush.msra.mxu0 %v423_v17 }
 0x19e   :  { %450 = vmatpush.msra.mxu0 %v422_v18 }
 0x1b6   :  { %v209_v40 = vpop.f32.mrf.mxu3 }
 0x1b7   :  { %v213_v41 = vmul.f32 %v212_v37, %v209_v40  ;;  %v515_v40 = vld [vmem:[#allocation7 + $0x1e8] sm:$0xff] }
 0x1b8   :  { %535 = vmatpush.msrb.mxu3 %v515_v40  ;;  %v391_v40 = vld [vmem:[#allocation7 + $0x168] sm:$0xff] }
 0x1b9   :  { %v216_v44 = vmul.f32 %v599_v38, %v213_v41 }
 0x1ba   :  { %536 = vmatpush.msrb.mxu3 %v514_v43  ;;  %v607_v43 = vld [vmem:[#allocation7 + $0x1f8] ss:$0 sm:$0xff] }
 0x1bb   :  { %v219_v46 = vadd.f32 %v600_v42, %v216_v44 }
 0x1bc   :  { %537 = vmatpush.msrb.mxu3 %v513_v47 }
 0x1bd   :  { %v579_v49 = vmul.f32 -1.442695, %v219_v46 }
 0x1bf   :  { %610 = vpow2.f32 %v579_v49 }
 0x1c5   :  { %v611_v54 = vpop.eup %610 }
 0x1c6   :  { %v223_v55 = vadd.f32 1.0, %v611_v54 }
 0x1c8   :  { %612 = vrcp.f32 %v223_v55  ;;  %v235_v59 = vand.u32 2147483648, %v223_v55  ;;  %v233_v61 = vand.u32 2147483647, %v223_v55  ;;  %vm229_vm8 = vweird.f32 %v223_v55 }
 0x1c9   :  { %614 = vrcp.f32 %v733_v33  ;;  %v398_v33 = vld [vmem:[#allocation7 + $0x1a0] sm:$0xff] }
 0x1ca   :  { %v236_v63 = vor.u32 1.1754944e-38, %v235_v59  ;;  %vm234_vm10 = vcmp.eq.f32.partialorder %v233_v61, 8.507059e+37 }
 0x1ce   :  { %v613_v56 = vpop.eup %612 }
 0x1cf   :  { %v225_v57 = vmul.f32 %v613_v56, %v223_v55  ;;  %vm230_vm7 = vweird.f32 %v613_v56  ;;  %v615_v35 = vpop.eup %614 }
 0x1d0   :  { %vm231_vm9 = vmor %vm229_vm8, %vm230_vm7  ;;  %v460_v36 = vmul.f32 32.0, %v615_v35  ;;  %vm464_vm14 = vweird.f32 %v615_v35 }
 0x1d1   :  { %v226_v58 = vsub.f32 1.0, %v225_v57 }
 0x1d2   :  { %v461_v37 = vsub.f32 1.0, %v460_v36  ;;  %v395_v36 = vld [vmem:[#allocation7 + $0x188] sm:$0xff] }
 0x1d3   :  { %v227_v60 = vmul.f32 %v613_v56, %v226_v58 }
 0x1d4   :  { %v462_v38 = vmul.f32 %v615_v35, %v461_v37  ;;  %v394_v37 = vld [vmem:[#allocation7 + $0x180] sm:$0xff] }
 0x1d5   :  { %v228_v62 = vadd.f32 %v613_v56, %v227_v60 }
 0x1d6   :  { %v463_v41 = vadd.f32 %v615_v35, %v462_v38  ;;  %v393_v38 = vld [vmem:[#allocation7 + $0x178] sm:$0xff] }
 0x1d7   :  { %v232_v0 = vsel %vm231_vm9, %v613_v56, %v228_v62 }
 0x1d8   :  { %v237_v1 = vsel %vm234_vm10, %v236_v63, %v232_v0  ;;  %v465_v44 = vsel %vm464_vm14, %v615_v35, %v463_v41  ;;  %v605_v63 = vld [vmem:[#allocation7 + $0x1c8] ss:$0 sm:$0xff]  ;;  %v396_v35 = vld [vmem:[#allocation7 + $0x190] sm:$0xff] }
 0x1d9   :  { %v239_v2 = vmul.f32 %v237_v1, %v219_v46 }
 0x1db   :  { %580 = vmatmul.msk.f32.vlgmr.msrb.gmra.mxu0 %vm100_vm1, %v239_v2  ;;  %v606_v2 = vld [vmem:[#allocation7 + $0x1d0] ss:$0 sm:$0xff] }
 0x1e3   :  { %587 = vmatmul.msk.f32.vlgmr.msra.gmra.mxu0 %vm427_vm12, %v59_v19  ;;  %v363_v19 = vld [vmem:[#allocation7 + $0x160] sm:$0x3] }
 0x1e4   :  { %583 = vmatpush.msk.msrb.mxu2 %vm165_vm2, %v363_v19  ;;  %vm549_vm2 = vcmask 7168  }
 0x1e6   :  { %410 = vmatpush.msra.mxu2 %v398_v33 }
 0x258   :  { %v270_v12 = vpop.f32.mrf.mxu0 }
 0x259   :  { %v271_v13 = vadd.f32 %v601_v11, %v270_v12 }
 0x25b   :  { %581 = vmatmul.msk.f32.vlgmr.msra.gmra.mxu3 %vm100_vm1, %v271_v13 }
 0x260   :  { %v452_v24 = vpop.f32.mrf.mxu0 }
 0x261   :  { %v453_v25 = vadd.f32 %v604_v23, %v452_v24 }
 0x263   :  { %v456_v26 = vsel %vm455_vm13, %v453_v25, 0.0  ;;  %v467_v27 = vmul.f32 %v453_v25, %v453_v25 }
 0x264   :  { %457 = vadd.xlane.f32.xlu1 %v456_v26 }
 0x265   :  { %v468_v28 = vsel %vm455_vm13, %v467_v27, 0.0 }
 0x26c   :  { %469 = vadd.xlane.f32.xlu1 %v468_v28 }
 0x2d7   :  { %v458_v34 = vpop.xlane.xlu1 %457 }
 0x2d8   :  { %v466_v45 = vmul.f32 %v465_v44, %v458_v34  ;;  %v397_v34 = vld [vmem:[#allocation7 + $0x198] sm:$0xff] }
 0x2d9   :  { %411 = vmatpush.msra.mxu2 %v397_v34 }
 0x2da   :  { %v472_v49 = vmul.f32 %v466_v45, %v466_v45  ;;  %v474_v61 = vsub.f32 %v453_v25, %v466_v45 }
 0x2db   :  { %412 = vmatpush.msra.mxu2 %v396_v35 }
 0x2dd   :  { %413 = vmatpush.msra.mxu2 %v395_v36 }
 0x2de   :  { %v303_v21 = vpop.f32.mrf.mxu3 }
 0x2df   :  { %v773_v22 = vadd.f32 %v602_v20, %v303_v21  ;;  %v470_v42 = vpop.xlane.xlu1 %469  ;;  %414 = vmatpush.msra.mxu2 %v394_v37 }
 0x2e0   :  { %v471_v46 = vmul.f32 %v470_v42, %v465_v44 }
 0x2e1   :  { %582 = vmatmul.msk.f32.vlgmr.msrb.gmra.mxu1 %vm100_vm1, %v773_v22  ;;  %415 = vmatpush.msra.mxu2 %v393_v38 }
 0x2e2   :  { %v473_v51 = vsub.f32 %v471_v46, %v472_v49 }
 0x2e3   :  { %416 = vmatpush.msra.mxu2 %v392_v39 }
 0x2e4   :  { %v475_v53 = vadd.f32 1e-05, %v473_v51 }
 0x2e5   :  { %417 = vmatpush.msra.mxu2 %v391_v40 }
 0x2e6   :  { %vm482_vm15 = vweird.f32 %v475_v53 }
 0x35e   :  { %v336_v30 = vpop.f32.mrf.mxu1 }
 0x35f   :  { %v337_v31 = vadd.f32 %v603_v29, %v336_v30 }
 0x361   :  { %v339_v32 = vsel %vm161_vm3, %v337_v31, -inf }
 0x362   :  { %340 = vmax.xlane.f32.xlu0 %v339_v32 }
 0x3d5   :  { %v341_v48 = vpop.xlane.xlu0 %340 }
 0x3d6   :  { %v342_v50 = vsub.f32 %v337_v31, %v341_v48 }
 0x3d8   :  { %v343_v52 = vmul.f32 1.442695, %v342_v50 }
 0x3da   :  { %616 = vpow2.f32 %v343_v52 }
 0x3db   :  { %618 = vrsqrt.f32 %v475_v53 }
 0x3e0   :  { %v617_v54 = vpop.eup %616 }
 0x3e1   :  { %v619_v55 = vpop.eup %618  ;;  %v345_v56 = vsel %vm161_vm3, %v617_v54, 0.0 }
 0x3e2   :  { %346 = vadd.xlane.f32.xlu0 %v345_v56  ;;  %v477_v57 = vmul.f32 %v619_v55, %v475_v53  ;;  %vm483_vm0 = vweird.f32 %v619_v55 }
 0x3e3   :  { %vm484_vm4 = vmor %vm482_vm15, %vm483_vm0 }
 0x3e4   :  { %v478_v58 = vmul.f32 %v619_v55, %v477_v57 }
 0x3e6   :  { %v479_v59 = vmul.f32 0.5, %v478_v58 }
 0x3e8   :  { %v480_v60 = vsub.f32 1.5, %v479_v59 }
 0x3ea   :  { %v481_v62 = vmul.f32 %v619_v55, %v480_v60 }
 0x3ec   :  { %v485_v0 = vsel %vm484_vm4, %v619_v55, %v481_v62 }
 0x3ed   :  { %v486_v1 = vmul.f32 %v485_v0, %v474_v61 }
 0x3ef   :  { %v489_v3 = vmul.f32 %v605_v63, %v486_v1 }
 0x3f1   :  { %v492_v4 = vadd.f32 %v606_v2, %v489_v3 }
 0x3f3   :  { %v588_v5 = vmul.f32 -1.442695, %v492_v4 }
 0x3f5   :  { %620 = vpow2.f32 %v588_v5 }
 0x3fb   :  { %v621_v6 = vpop.eup %620 }
 0x3fc   :  { %v496_v7 = vadd.f32 1.0, %v621_v6 }
 0x3fe   :  { %622 = vrcp.f32 %v496_v7  ;;  %v508_v10 = vand.u32 2147483648, %v496_v7  ;;  %vm502_vm5 = vweird.f32 %v496_v7  ;;  %v506_v12 = vand.u32 2147483647, %v496_v7 }
 0x400   :  { %v509_v14 = vor.u32 1.1754944e-38, %v508_v10  ;;  %vm507_vm8 = vcmp.eq.f32.partialorder %v506_v12, 8.507059e+37 }
 0x404   :  { %v623_v8 = vpop.eup %622 }
 0x405   :  { %v498_v9 = vmul.f32 %v623_v8, %v496_v7  ;;  %vm503_vm6 = vweird.f32 %v623_v8 }
 0x406   :  { %vm504_vm7 = vmor %vm502_vm5, %vm503_vm6 }
 0x407   :  { %v499_v11 = vsub.f32 1.0, %v498_v9 }
 0x409   :  { %v500_v13 = vmul.f32 %v623_v8, %v499_v11 }
 0x40b   :  { %v501_v15 = vadd.f32 %v623_v8, %v500_v13 }
 0x40d   :  { %v505_v16 = vsel %vm504_vm7, %v623_v8, %v501_v15 }
 0x40e   :  { %v510_v17 = vsel %vm507_vm8, %v509_v14, %v505_v16 }
 0x40f   :  { %v512_v18 = vmul.f32 %v510_v17, %v492_v4 }
 0x411   :  { %589 = vmatmul.msk.f32.vlgmr.msrb.gmra.mxu3 %vm455_vm13, %v512_v18 }
 0x455   :  { %v347_v20 = vpop.xlane.xlu0 %346 }
 0x456   :  { %624 = vrcp.f32 %v347_v20  ;;  %v359_v25 = vand.u32 2147483648, %v347_v20  ;;  %v357_v27 = vand.u32 2147483647, %v347_v20  ;;  %vm353_vm10 = vweird.f32 %v347_v20 }
 0x458   :  { %v360_v29 = vor.u32 1.1754944e-38, %v359_v25  ;;  %vm358_vm12 = vcmp.eq.f32.partialorder %v357_v27, 8.507059e+37 }
 0x45c   :  { %v625_v21 = vpop.eup %624 }
 0x45d   :  { %v349_v23 = vmul.f32 %v625_v21, %v347_v20  ;;  %vm354_vm9 = vweird.f32 %v625_v21 }
 0x45e   :  { %vm355_vm11 = vmor %vm353_vm10, %vm354_vm9 }
 0x45f   :  { %v350_v24 = vsub.f32 1.0, %v349_v23 }
 0x461   :  { %v351_v26 = vmul.f32 %v625_v21, %v350_v24 }
 0x463   :  { %v352_v28 = vadd.f32 %v625_v21, %v351_v26 }
 0x465   :  { %v356_v30 = vsel %vm355_vm11, %v625_v21, %v352_v28 }
 0x466   :  { %v361_v31 = vsel %vm358_vm12, %v360_v29, %v356_v30 }
 0x467   :  { %v362_v32 = vmul.f32 %v617_v54, %v361_v31 }
 0x469   :  { %584 = vmatmul.msk.f32.vlgmr.msrb.gmra.mxu2 %vm161_vm3, %v362_v32  ;;  %vm551_vm3 = vcmask 23552  }
 0x494   :  { %v539_v44 = vpop.f32.mrf.mxu3 }
 0x495   :  { %v540_v45 = vadd.f32 %v607_v43, %v539_v44 }
 0x4ec   :  { %v387_v41 = vpop.f32.mrf.mxu2 }
 0x4ed   :  { %v390_v42 = vmul.f32 %v387_v41, %v773_v22 }
 0x4ef   :  { %585 = vmatmul.msk.f32.vlgmr.msra.gmra.mxu2 %vm100_vm1, %v390_v42 }
 0x572   :  { %v419_v46 = vpop.f32.mrf.mxu2 }
 0x573   :  { %v542_v47 = vmul.f32 %v540_v45, %v419_v46 }
 0x575   :  { %v543_v48 = vsel %vm455_vm13, %v542_v47, 0.0 }
 0x576   :  { %544 = vadd.xlane.f32.xlu2 %v543_v48 }
 0x58e   :  { %546 = vrot.lane.b32.xlu2 %v362_v32, %s734_s0 }
 0x5e9   :  { %v545_v49 = vpop.xlane.xlu2 %544 }
 0x5f1   :  { %v547_v22 = vpop.permute.xlu2 %546 }
 0x5f2   :  { %v550_v50 = vsel %vm549_vm2, %v545_v49, %v547_v22 }
 0x5f3   :  { %v552_v51 = vsel %vm551_vm3, %v550_v50, 0.0 }
 0x5f4   :  { %553 = vst [vmem:[#allocation8] sm:$0xff] %v552_v51 }
 0x5f5   :  { %564 = dma.vmem_to_hbm [thread:$0]  %s560_s28, 128, %s562_s4, [#allocation4]  }
 0x5f6   :  { %726 = dma.done.wait [#allocation4], 128  }
 0x5f7   :  { %727 = vsyncadd [#allocation4], 4294967168 }
 0x5f8   :  { %569 = vsyncpa [#allocation3], 1 }
 0x5f9   :  { %570 = vsyncpa [#allocation6], 1 }
 0x5fa   :  { %571 = vsyncpa [#allocation4], 1 }

</bundles_post_ra>
